<compile_context>
chip_gen: v5e
topology: v5e:2x2
jax: 0.10.0
libtpu: 0.0.40
codegen_flags: <defaults>
</compile_context>

<pallas_src>
import functools

import jax
import jax.numpy as jnp
from jax.experimental import pallas as pl
from jax.experimental.pallas import tpu as pltpu

_HID = 128                      # padded feature width (all layer dims <= 128)
_COMPUTE_DTYPE = jnp.bfloat16   # MXU operand dtype; accumulation stays f32
_MAX_BATCH_TILE = 2048          # large tile amortizes ~0.35us/step overhead

# Fixed hidden widths of the module, rounded up to the bf16 sublane quantum.
_H1, _H2, _H3 = 25, 50, 25
_P1, _P2, _P3 = 32, 64, 32      # round_up(25,16), round_up(50,16), round_up(25,16)


def _round_up(x, m):
    return ((x + m - 1) // m) * m


def _choose_batch_tile(B):
    """Big tiles for overhead amortization; >=2 grid steps for v7x megacore."""
    if B <= 128:
        return _round_up(B, 16)                      # single small tile
    return min(_MAX_BATCH_TILE, _round_up(-(-B // 2), 128))


def _mlp_kernel(x_ref, w_ref, b_ref, o_ref, *, ninput, p1, p2, p3):
    """Whole 4-layer MLP on one (TB, ...) batch tile; weights stay resident."""
    cdt = w_ref.dtype                                # bf16 MXU operands
    x = x_ref[...].astype(cdt)                       # in-kernel f32 -> bf16 cast

    # Layer 1: contract over the true ninput, emit only p1 live columns.
    h = jnp.dot(x, w_ref[0, :ninput, :p1], preferred_element_type=jnp.float32)
    h = jnp.maximum(h + b_ref[0, :, :p1], 0.0)
    # Layer 2: K=p1, N=p2.
    h = jnp.dot(h.astype(cdt), w_ref[1, :p1, :p2],
                preferred_element_type=jnp.float32)
    h = jnp.maximum(h + b_ref[1, :, :p2], 0.0)
    # Layer 3: K=p2, N=p3.
    h = jnp.dot(h.astype(cdt), w_ref[2, :p2, :p3],
                preferred_element_type=jnp.float32)
    h = jnp.maximum(h + b_ref[2, :, :p3], 0.0)
    # Layer 4 (no activation): full 128 lanes for an unmasked lane-dense store.
    h = jnp.dot(h.astype(cdt), w_ref[3, :p3, :],
                preferred_element_type=jnp.float32)
    o_ref[...] = (h + b_ref[3]).astype(o_ref.dtype)  # bf16 output slab


def pack_params(params, compute_dtype=_COMPUTE_DTYPE):
    """One-time glue: PyTorch-convention W:(out,in), b:(out,) -> packed,
    pre-transposed, zero-padded, pre-cast kernel operands."""
    w_packed = jnp.zeros((4, _HID, _HID), compute_dtype)
    b_packed = jnp.zeros((4, 1, _HID), jnp.float32)
    for l in range(4):
        w = params[f"w{l + 1}"]          # (out, in)
        b = params[f"b{l + 1}"]          # (out,)
        fan_out, fan_in = w.shape
        assert fan_in <= _HID and fan_out <= _HID, "layer dims must fit one lane tile"
        w_packed = w_packed.at[l, :fan_in, :fan_out].set(w.T.astype(compute_dtype))
        b_packed = b_packed.at[l, 0, :fan_out].set(b.astype(jnp.float32))
    return w_packed, b_packed


@functools.partial(jax.jit, static_argnames=("noutput",))
def reinforcement_learner_forward(x, w_packed, b_packed, *, noutput):
    """x: (B, ninput) float32. Packed params from pack_params().
    Returns (B, noutput) float32."""
    B, ninput = x.shape
    TB = _choose_batch_tile(B)
    grid = (pl.cdiv(B, TB),)     # ragged last block overhangs; OOB rows masked

    kernel = functools.partial(_mlp_kernel, ninput=ninput, p1=_P1, p2=_P2, p3=_P3)
    cost = pl.CostEstimate(
        flops=2 * B * (ninput * _P1 + _P1 * _P2 + _P2 * _P3 + _P3 * _HID),
        transcendentals=0,
        bytes_accessed=(B * ninput * 4            # streamed f32 input
                        + B * _HID * 2            # streamed bf16 output slab
                        + 4 * _HID * _HID * 2     # resident bf16 weights
                        + 4 * _HID * 4),          # resident f32 biases
    )

    out = pl.pallas_call(
        kernel,
        out_shape=jax.ShapeDtypeStruct((B, _HID), jnp.bfloat16),
        grid_spec=pltpu.PrefetchScalarGridSpec(
            num_scalar_prefetch=0,
            grid=grid,
            in_specs=[
                pl.BlockSpec((TB, ninput), lambda i: (i, 0)),        # streamed
                pl.BlockSpec((4, _HID, _HID), lambda i: (0, 0, 0)),  # resident
                pl.BlockSpec((4, 1, _HID), lambda i: (0, 0, 0)),     # resident
            ],
            out_specs=pl.BlockSpec((TB, _HID), lambda i: (i, 0)),
        ),
        compiler_params=pltpu.CompilerParams(
            dimension_semantics=("parallel",)),
        cost_estimate=cost,
    )(x, w_packed, b_packed)

    return out[:, :noutput].astype(jnp.float32)


def init_params(key, ninput, noutput):
    """Deterministic PyTorch-style init: U(-1/sqrt(fan_in), 1/sqrt(fan_in))."""
    dims = [(ninput, _H1), (_H1, _H2), (_H2, _H3), (_H3, noutput)]
    params = {}
    for i, (fan_in, fan_out) in enumerate(dims, start=1):
        key, kw, kb = jax.random.split(key, 3)
        bound = 1.0 / jnp.sqrt(float(fan_in))
        params[f"w{i}"] = jax.random.uniform(
            kw, (fan_out, fan_in), jnp.float32, minval=-bound, maxval=bound)
        params[f"b{i}"] = jax.random.uniform(
            kb, (fan_out,), jnp.float32, minval=-bound, maxval=bound)
    return params


def reference_forward(x, params, compute_dtype=jnp.float32):
    """Plain-JAX reference matching the PyTorch nn.Sequential.  With
    compute_dtype=bf16 it mirrors the kernel's MXU-operand precision."""
    def layer(h, w, b, relu):
        y = jnp.dot(h.astype(compute_dtype), w.T.astype(compute_dtype),
                    preferred_element_type=jnp.float32) + b
        return jnp.maximum(y, 0.0) if relu else y
    h = layer(x, params["w1"], params["b1"], True)
    h = layer(h, params["w2"], params["b2"], True)
    h = layer(h, params["w3"], params["b3"], True)
    return layer(h, params["w4"], params["b4"], False)


if __name__ == "__main__":
    key = jax.random.PRNGKey(0)
    ninput, noutput = 32, 4

    kp, kx1, kx2 = jax.random.split(key, 3)
    params = init_params(kp, ninput, noutput)
    w_packed, b_packed = pack_params(params)      # one-time, outside hot path

    def check(x):
        out = reinforcement_learner_forward(x, w_packed, b_packed, noutput=noutput)
        out = jax.block_until_ready(out)
        assert out.shape == (x.shape[0], noutput)
        # Matched-precision reference (bf16 MXU operands, f32 accumulate);
        # extra slack for the bf16 output-slab rounding.
        ref_bf16 = reference_forward(x, params, compute_dtype=_COMPUTE_DTYPE)
        assert jnp.allclose(out, ref_bf16, atol=1e-2, rtol=2e-2), \
            "mismatch vs matched-precision reference"
        # Loose check against the pure-f32 PyTorch-equivalent reference.
        ref_f32 = reference_forward(x, params, compute_dtype=jnp.float32)
        assert jnp.allclose(out, ref_f32, atol=1e-1, rtol=1e-1), \
            "mismatch vs f32 reference"

    # Small batch: single (16, ninput) tile.
    check(jax.random.normal(kx1, (16, ninput), jnp.float32))
    # Ragged batch: TB=128, grid=(2,), masked overhanging last block.
    check(jax.random.normal(kx2, (200, ninput), jnp.float32))

    print("KERNEL_OK")
</pallas_src>

<mosaic_0001>
module attributes {stable_mosaic.version = 11 : i64} {
  func.func @_mlp_kernel(%arg0: i32, %arg1: memref<16x32xf32, #tpu.memory_space<vmem>>, %arg2: memref<4x128x128xbf16, #tpu.memory_space<vmem>>, %arg3: memref<4x1x128xf32, #tpu.memory_space<vmem>>, %arg4: memref<16x128xbf16, #tpu.memory_space<vmem>>) attributes {dimension_semantics = [#tpu.dimension_semantics<parallel>], iteration_bounds = array<i64: 1>, scalar_prefetch = 0 : i64, scratch_operands = 0 : i64, tpu.core_type = #tpu.core_type<tc>, window_params = [{transform_indices = @transform_0, window_bounds = array<i64: 16, 32>}, {pipeline_mode = #tpu.pipeline_mode<synchronous>, transform_indices = @transform_1, window_bounds = array<i64: 4, 128, 128>}, {pipeline_mode = #tpu.pipeline_mode<synchronous>, transform_indices = @transform_2, window_bounds = array<i64: 4, 1, 128>}, {transform_indices = @transform_3, window_bounds = array<i64: 16, 128>}]} {
    %c0 = arith.constant 0 : index
    %c0_0 = arith.constant 0 : index
    %0 = vector.load %arg1[%c0, %c0_0] : memref<16x32xf32, #tpu.memory_space<vmem>>, vector<16x32xf32>
    %1 = arith.truncf %0 : vector<16x32xf32> to vector<16x32xbf16>
    %c0_1 = arith.constant 0 : index
    %c0_2 = arith.constant 0 : index
    %c0_3 = arith.constant 0 : index
    %2 = vector.load %arg2[%c0_1, %c0_2, %c0_3] : memref<4x128x128xbf16, #tpu.memory_space<vmem>>, vector<1x32x32xbf16>
    %3 = vector.shape_cast %2 : vector<1x32x32xbf16> to vector<32x32xbf16>
    %cst = arith.constant dense<0.000000e+00> : vector<16x32xf32>
    %4 = tpu.matmul %1, %3, %cst {dimension_numbers = #tpu.dot_dimension_numbers<[1], [0], [0], [1], [0, 0, 1, 1], [], []>} : vector<16x32xbf16>, vector<32x32xbf16>, vector<16x32xf32> -> vector<16x32xf32>
    %c0_4 = arith.constant 0 : index
    %c0_5 = arith.constant 0 : index
    %c0_6 = arith.constant 0 : index
    %5 = vector.load %arg3[%c0_4, %c0_5, %c0_6] : memref<4x1x128xf32, #tpu.memory_space<vmem>>, vector<1x1x32xf32>
    %6 = vector.shape_cast %5 : vector<1x1x32xf32> to vector<1x32xf32>
    %7 = vector.broadcast %6 : vector<1x32xf32> to vector<16x32xf32>
    %8 = arith.addf %4, %7 : vector<16x32xf32>
    %cst_7 = arith.constant 0.000000e+00 : f32
    %9 = vector.broadcast %cst_7 : f32 to vector<16x32xf32>
    %10 = arith.maximumf %8, %9 : vector<16x32xf32>
    %11 = arith.truncf %10 : vector<16x32xf32> to vector<16x32xbf16>
    %c1 = arith.constant 1 : index
    %c0_8 = arith.constant 0 : index
    %c0_9 = arith.constant 0 : index
    %12 = vector.load %arg2[%c1, %c0_8, %c0_9] : memref<4x128x128xbf16, #tpu.memory_space<vmem>>, vector<1x32x64xbf16>
    %13 = vector.shape_cast %12 : vector<1x32x64xbf16> to vector<32x64xbf16>
    %cst_10 = arith.constant dense<0.000000e+00> : vector<16x64xf32>
    %14 = tpu.matmul %11, %13, %cst_10 {dimension_numbers = #tpu.dot_dimension_numbers<[1], [0], [0], [1], [0, 0, 1, 1], [], []>} : vector<16x32xbf16>, vector<32x64xbf16>, vector<16x64xf32> -> vector<16x64xf32>
    %c1_11 = arith.constant 1 : index
    %c0_12 = arith.constant 0 : index
    %c0_13 = arith.constant 0 : index
    %15 = vector.load %arg3[%c1_11, %c0_12, %c0_13] : memref<4x1x128xf32, #tpu.memory_space<vmem>>, vector<1x1x64xf32>
    %16 = vector.shape_cast %15 : vector<1x1x64xf32> to vector<1x64xf32>
    %17 = vector.broadcast %16 : vector<1x64xf32> to vector<16x64xf32>
    %18 = arith.addf %14, %17 : vector<16x64xf32>
    %cst_14 = arith.constant 0.000000e+00 : f32
    %19 = vector.broadcast %cst_14 : f32 to vector<16x64xf32>
    %20 = arith.maximumf %18, %19 : vector<16x64xf32>
    %21 = arith.truncf %20 : vector<16x64xf32> to vector<16x64xbf16>
    %c2 = arith.constant 2 : index
    %c0_15 = arith.constant 0 : index
    %c0_16 = arith.constant 0 : index
    %22 = vector.load %arg2[%c2, %c0_15, %c0_16] : memref<4x128x128xbf16, #tpu.memory_space<vmem>>, vector<1x64x32xbf16>
    %23 = vector.shape_cast %22 : vector<1x64x32xbf16> to vector<64x32xbf16>
    %cst_17 = arith.constant dense<0.000000e+00> : vector<16x32xf32>
    %24 = tpu.matmul %21, %23, %cst_17 {dimension_numbers = #tpu.dot_dimension_numbers<[1], [0], [0], [1], [0, 0, 1, 1], [], []>} : vector<16x64xbf16>, vector<64x32xbf16>, vector<16x32xf32> -> vector<16x32xf32>
    %c2_18 = arith.constant 2 : index
    %c0_19 = arith.constant 0 : index
    %c0_20 = arith.constant 0 : index
    %25 = vector.load %arg3[%c2_18, %c0_19, %c0_20] : memref<4x1x128xf32, #tpu.memory_space<vmem>>, vector<1x1x32xf32>
    %26 = vector.shape_cast %25 : vector<1x1x32xf32> to vector<1x32xf32>
    %27 = vector.broadcast %26 : vector<1x32xf32> to vector<16x32xf32>
    %28 = arith.addf %24, %27 : vector<16x32xf32>
    %cst_21 = arith.constant 0.000000e+00 : f32
    %29 = vector.broadcast %cst_21 : f32 to vector<16x32xf32>
    %30 = arith.maximumf %28, %29 : vector<16x32xf32>
    %31 = arith.truncf %30 : vector<16x32xf32> to vector<16x32xbf16>
    %c3 = arith.constant 3 : index
    %c0_22 = arith.constant 0 : index
    %c0_23 = arith.constant 0 : index
    %32 = vector.load %arg2[%c3, %c0_22, %c0_23] : memref<4x128x128xbf16, #tpu.memory_space<vmem>>, vector<1x32x128xbf16>
    %33 = vector.shape_cast %32 : vector<1x32x128xbf16> to vector<32x128xbf16>
    %cst_24 = arith.constant dense<0.000000e+00> : vector<16x128xf32>
    %34 = tpu.matmul %31, %33, %cst_24 {dimension_numbers = #tpu.dot_dimension_numbers<[1], [0], [0], [1], [0, 0, 1, 1], [], []>} : vector<16x32xbf16>, vector<32x128xbf16>, vector<16x128xf32> -> vector<16x128xf32>
    %c3_25 = arith.constant 3 : index
    %c0_26 = arith.constant 0 : index
    %c0_27 = arith.constant 0 : index
    %35 = vector.load %arg3[%c3_25, %c0_26, %c0_27] : memref<4x1x128xf32, #tpu.memory_space<vmem>>, vector<1x1x128xf32>
    %36 = vector.shape_cast %35 : vector<1x1x128xf32> to vector<1x128xf32>
    %37 = vector.broadcast %36 : vector<1x128xf32> to vector<16x128xf32>
    %38 = arith.addf %34, %37 : vector<16x128xf32>
    %39 = arith.truncf %38 : vector<16x128xf32> to vector<16x128xbf16>
    %c0_28 = arith.constant 0 : index
    %c0_29 = arith.constant 0 : index
    %40 = vector.load %arg4[%c0_28, %c0_29] : memref<16x128xbf16, #tpu.memory_space<vmem>>, vector<16x128xbf16>
    tpu.vector_store %arg4[%c0_28, %c0_29], %39 {strides = array<i32>} : memref<16x128xbf16, #tpu.memory_space<vmem>>, vector<16x128xbf16>,
    return
  }
  func.func @transform_0(%arg0: i32) -> (i32, i32) {
    %c0_i32 = arith.constant 0 : i32
    %c0_i32_0 = arith.constant 0 : i32
    return %arg0, %c0_i32 : i32, i32
  }
  func.func @transform_1(%arg0: i32) -> (i32, i32, i32) {
    %c0_i32 = arith.constant 0 : i32
    %c0_i32_0 = arith.constant 0 : i32
    %c0_i32_1 = arith.constant 0 : i32
    %c0_i32_2 = arith.constant 0 : i32
    return %c0_i32, %c0_i32_0, %c0_i32_1 : i32, i32, i32
  }
  func.func @transform_2(%arg0: i32) -> (i32, i32, i32) {
    %c0_i32 = arith.constant 0 : i32
    %c0_i32_0 = arith.constant 0 : i32
    %c0_i32_1 = arith.constant 0 : i32
    %c0_i32_2 = arith.constant 0 : i32
    return %c0_i32, %c0_i32_0, %c0_i32_1 : i32, i32, i32
  }
  func.func @transform_3(%arg0: i32) -> (i32, i32) {
    %c0_i32 = arith.constant 0 : i32
    %c0_i32_0 = arith.constant 0 : i32
    return %arg0, %c0_i32 : i32, i32
  }
}

</mosaic_0001>

<bundles_post_ra>
// kernel: reinforcement_learner_forward.1
= control target key start
LH: loop header
LB: loop body
LE: loop exit
PB: predicated region body
PF: predicated region fallthrough
CT: control target
= control target key end

     0   :  { %8 = vsyncpa [#allocation3], 0  ;;  %s448_s0 = inlined_call_operand.hbm [shape: f32[16,32], index: 0, kind: input, shape index: {}]   ;;  %s449_s1 = inlined_call_operand.hbm [shape: bf16[4,128,128], index: 1, kind: input, shape index: {}]   ;;  %s450_s2 = inlined_call_operand.hbm [shape: f32[4,1,128], index: 2, kind: input, shape index: {}]   ;;  %s451_s3 = inlined_call_operand.vmem [shape: bf16[16,128], index: 3, kind: output, shape index: {}]  }
   0x1   :  { %9 = vsyncpa [#allocation5], 0  ;;  %s27_s14 = sshll.u32 %s449_s1, 4  ;;  %s404_s15 = smov [#allocation4]   ;;  %s28_s14 = int_to_ptr.hbm [resolvable:$true] %s27_s14 }
   0x2   :  { %s29_s16 = sshll.u32 %s404_s15, 4  ;;  %s14_s19 = sshll.u32 %s448_s0, 4  ;;  %s30_s16 = int_to_ptr.vmem [resolvable:$true] %s29_s16  ;;  %s15_s19 = int_to_ptr.hbm [resolvable:$true] %s14_s19 }
   0x3   :  { %s405_s20 = smov 64   ;;  %s406_s21 = smov 4  }
   0x4   :  { %35 = dma.hbm_to_vmem [thread:$0]  %s28_s14, 4096, %s30_s16, [#allocation5], %s405_s20, %s405_s20, %s406_s21  }
   0x5   :  { %s407_s22 = smov [#allocation2]   ;;  %s408_s24 = smov 128  }
   0x6   :  { %s16_s23 = sshll.u32 %s407_s22, 4  ;;  %s409_s25 = smov 8   ;;  %s17_s23 = int_to_ptr.vmem [resolvable:$true] %s16_s23 }
   0x7   :  { %22 = dma.hbm_to_vmem [thread:$0]  %s15_s19, 256, %s17_s23, [#allocation3], %s408_s24, %s408_s24, %s409_s25  }
   0x8   :  { %s40_s27 = sshll.u32 %s450_s2, 4  ;;  %s410_s28 = smov [#allocation6]   ;;  %s41_s27 = int_to_ptr.hbm [resolvable:$true] %s40_s27 }
   0x9   :  { %s42_s29 = sshll.u32 %s410_s28, 4  ;;  %s411_s30 = smov 16   ;;  %s43_s29 = int_to_ptr.vmem [resolvable:$true] %s42_s29 }
   0xa   :  { %s412_s0 = smov 1  }
   0xb   :  { %48 = dma.hbm_to_vmem [thread:$0]  %s41_s27, 64, %s43_s29, [#allocation5], %s411_s30, %s411_s30, %s412_s0  }
   0xc   :  { %400 = dma.done.wait [#allocation3], 256  }
   0xd   :  { %401 = vsyncadd [#allocation3], 4294967040 }
   0xe   :  { %402 = dma.done.wait [#allocation5], 4160  }
   0xf   :  { %403 = vsyncadd [#allocation5], 4294963136  ;;  %v301_v0 = vld [vmem:[#allocation4 + $0x8] sm:$0xff]  ;;  %v300_v1 = vld [vmem:[#allocation4] sm:$0xff]  ;;  %vm85_vm0 = vcmask 261120   ;;  %vm186_vm1 = vcmask 523264  }
  0x10   :  { %v62_v2 = vld [vmem:[#allocation2] sm:$0xff]  ;;  %v63_v3 = vld [vmem:[#allocation2 + $0x8] sm:$0xff]  ;;  %95 = vmatpush.bf16.msra.mxu0 %v301_v0  ;;  %v303_v5 = vld [vmem:[#allocation4 + $0x48] sm:$0xff] }
  0x11   :  { %v64_v4 = vpack.c.bf16 %v63_v3, %v62_v2  ;;  %137 = vmatpush.bf16.msra.mxu1 %v303_v5  ;;  %v302_v6 = vld [vmem:[#allocation4 + $0x40] sm:$0xff]  ;;  %v307_v15 = vld [vmem:[#allocation4 + $0x98] sm:$0xff]  ;;  %v306_v16 = vld [vmem:[#allocation4 + $0x90] sm:$0xff] }
  0x12   :  { %v324_v8 = vld [vmem:[#allocation6] ss:$0 sm:$0xff]  ;;  %194 = vmatpush.bf16.msra.mxu2 %v307_v15  ;;  %v305_v17 = vld [vmem:[#allocation4 + $0x88] sm:$0xff]  ;;  %v325_v20 = vld [vmem:[#allocation6 + $0x1] ss:$0 sm:$0xff] }
  0x13   :  { %v304_v18 = vld [vmem:[#allocation4 + $0x80] sm:$0xff]  ;;  %v309_v27 = vld [vmem:[#allocation4 + $0xc8] sm:$0xff] }
  0x14   :  { %96 = vmatpush.bf16.msra.mxu0 %v300_v1  ;;  %238 = vmatpush.bf16.msra.mxu3 %v309_v27  ;;  %v308_v28 = vld [vmem:[#allocation4 + $0xc0] sm:$0xff] }
  0x15   :  { %138 = vmatpush.bf16.msra.mxu1 %v302_v6  ;;  %v326_v30 = vld [vmem:[#allocation6 + $0x2] ss:$0 sm:$0xff]  ;;  %v327_v38 = vld [vmem:[#allocation6 + $0x3] ss:$0 sm:$0xff] }
  0x16   :  { %195 = vmatpush.bf16.msra.mxu2 %v306_v16 }
  0x17   :  { %264 = vmatmul.msk.bf16.vlgmr.msra.gmra.mxu0 %vm85_vm0, %v64_v4 }
  0x18   :  { %239 = vmatpush.bf16.msra.mxu3 %v308_v28 }
  0x1a   :  { %196 = vmatpush.bf16.msra.mxu2 %v305_v17 }
  0x1e   :  { %197 = vmatpush.bf16.msra.mxu2 %v304_v18 }
  0x94   :  { %v98_v7 = vpop.f32.mrf.mxu0 }
  0x95   :  { %v99_v9 = vadd.f32 %v324_v8, %v98_v7 }
  0x97   :  { %v103_v12 = vmax.f32 %v99_v9, 0.0 }
  0x9c   :  { %v100_v10 = vpop.f32.mrf.mxu0 }
  0x9d   :  { %v101_v11 = vadd.f32 %v324_v8, %v100_v10 }
  0x9f   :  { %v104_v13 = vmax.f32 %v101_v11, 0.0 }
  0xa1   :  { %v105_v14 = vpack.c.bf16 %v104_v13, %v103_v12 }
  0xa3   :  { %273 = vmatmul.msk.bf16.vlgmr.msra.gmra.mxu1 %vm85_vm0, %v105_v14 }
 0x120   :  { %v140_v19 = vpop.f32.mrf.mxu1 }
 0x121   :  { %v141_v21 = vadd.f32 %v325_v20, %v140_v19 }
 0x123   :  { %v145_v24 = vmax.f32 %v141_v21, 0.0 }
 0x128   :  { %v142_v22 = vpop.f32.mrf.mxu1 }
 0x129   :  { %v143_v23 = vadd.f32 %v325_v20, %v142_v22 }
 0x12b   :  { %v146_v25 = vmax.f32 %v143_v23, 0.0 }
 0x12d   :  { %v147_v26 = vpack.c.bf16 %v146_v25, %v145_v24 }
 0x12f   :  { %290 = vmatmul.msk.bf16.vlgmr.msra.gmra.mxu2 %vm186_vm1, %v147_v26 }
 0x1b2   :  { %v199_v29 = vpop.f32.mrf.mxu2 }
 0x1b3   :  { %v200_v31 = vadd.f32 %v326_v30, %v199_v29 }
 0x1b5   :  { %v204_v34 = vmax.f32 %v200_v31, 0.0 }
 0x1ba   :  { %v201_v32 = vpop.f32.mrf.mxu2 }
 0x1bb   :  { %v202_v33 = vadd.f32 %v326_v30, %v201_v32 }
 0x1bd   :  { %v205_v35 = vmax.f32 %v202_v33, 0.0 }
 0x1bf   :  { %v206_v36 = vpack.c.bf16 %v205_v35, %v204_v34 }
 0x1c1   :  { %299 = vmatmul.msk.bf16.vlgmr.msra.gmra.mxu3 %vm85_vm0, %v206_v36 }
 0x244   :  { %v241_v37 = vpop.f32.mrf.mxu3 }
 0x245   :  { %v242_v40 = vadd.f32 %v327_v38, %v241_v37 }
 0x24c   :  { %v243_v39 = vpop.f32.mrf.mxu3 }
 0x24d   :  { %v244_v41 = vadd.f32 %v327_v38, %v243_v39 }
 0x24f   :  { %v313_v42 = vpack.c.bf16 %v244_v41, %v242_v40 }
 0x251   :  { %314 = vst [vmem:[%s451_s3] sm:$0xff] %v313_v42  }
 0x252   :  { %254 = vsyncpa [#allocation3], 1 }
 0x253   :  { %255 = vsyncpa [#allocation5], 1 }

</bundles_post_ra>
